<compile_context>
chip_gen: v7x
topology: tpu7x:2x2x1
jax: 0.10.0
libtpu: 0.0.40
codegen_flags: <defaults>
</compile_context>

<pallas_src>
import functools

import jax
import jax.numpy as jnp
from jax import lax
from jax.experimental import pallas as pl
from jax.experimental.pallas import tpu as pltpu


def _round_up(x: int, m: int) -> int:
    return ((x + m - 1) // m) * m


# ---------------------------------------------------------------------------
# Kernel 1: fused QKV projection, one pass over sequence tiles.
# ---------------------------------------------------------------------------
def _qkv_proj_kernel(x_ref, w_ref, q_ref, k_ref, v_ref, *, scale, d_out_pad):
    x = x_ref[...]                                             # [t, d_in_pad]  f32
    w = w_ref[...]                                             # [d_in_pad, 3*d_out_pad] f32
    # One wide MXU pass per x tile, fp32 accumulation; slices are 128-lane aligned.
    qkv = jnp.dot(x, w, preferred_element_type=jnp.float32)    # [t, 3*d_out_pad]
    # 1/sqrt(d_out) folded into Q (O(S*d_out) multiplies instead of O(S^2)).
    q_ref[...] = (qkv[:, :d_out_pad] * scale).astype(q_ref.dtype)
    k_ref[...] = qkv[:, d_out_pad:2 * d_out_pad].astype(k_ref.dtype)
    v_ref[...] = qkv[:, 2 * d_out_pad:].astype(v_ref.dtype)


# ---------------------------------------------------------------------------
# Kernel 2: flash attention (online softmax) over pre-projected bf16 Q/K/V tiles.
# ---------------------------------------------------------------------------
def _flash_attn_kernel(q_ref, k_ref, v_ref, o_ref, m_ref, l_ref, acc_ref,
                       *, seq_len, tk):
    ki = pl.program_id(1)

    @pl.when(ki == 0)
    def _init():
        m_ref[...] = jnp.full_like(m_ref, -jnp.inf)
        l_ref[...] = jnp.zeros_like(l_ref)
        acc_ref[...] = jnp.zeros_like(acc_ref)

    q = q_ref[...]                       # bf16 [tq, d_out_pad], scale pre-folded
    k = k_ref[...]                       # bf16 [tk, d_out_pad]
    v = v_ref[...]                       # bf16 [tk, d_out_pad]

    # scores = q @ k^T : bf16 operands on the MXU, f32 accumulation, no explicit transpose.
    s = lax.dot_general(q, k, (((1,), (1,)), ((), ())),
                        preferred_element_type=jnp.float32)    # [tq, tk] f32

    # Mask padded key columns.  Only emitted when seq is not a tile multiple; with this
    # tiling only the last ki tile contains padding and every tile has >=1 real key.
    if seq_len % tk != 0:
        key_idx = ki * tk + lax.broadcasted_iota(jnp.int32, s.shape, 1)
        s = jnp.where(key_idx < seq_len, s, jnp.float32(-1e30))

    # Online softmax accumulation (fp32 running stats).
    m_prev = m_ref[...]
    m_new = jnp.maximum(m_prev, jnp.max(s, axis=-1, keepdims=True))
    alpha = jnp.exp(m_prev - m_new)
    p = jnp.exp(s - m_new)
    l_ref[...] = alpha * l_ref[...] + jnp.sum(p, axis=-1, keepdims=True)
    acc_ref[...] = alpha * acc_ref[...] + jnp.dot(
        p.astype(jnp.bfloat16), v, preferred_element_type=jnp.float32)
    m_ref[...] = m_new

    @pl.when(ki == pl.num_programs(1) - 1)
    def _finalize():
        # Exact reciprocal: once per q-tile, essentially free.
        inv_l = pl.reciprocal(l_ref[...], approx=False)
        o_ref[...] = (acc_ref[...] * inv_l).astype(o_ref.dtype)


def self_attention_v1(x, w_query, w_key, w_value, *, max_tile=256):
    """Pallas forward pass of SelfAttention_v1: softmax((xWq)(xWk)^T / sqrt(d_out)) (xWv)."""
    seq, d_in = x.shape
    d_out = w_query.shape[1]
    scale = 1.0 / (float(d_out) ** 0.5)      # scale uses the TRUE d_out, not the padded one

    d_in_p = _round_up(d_in, 128)
    d_out_p = _round_up(d_out, 128)

    # One tile size for q and k axes; multiple of 8 sublanes, capped at max_tile.
    t = min(max_tile, _round_up(seq, 8))
    s_pad = _round_up(seq, t)
    n_tiles = s_pad // t

    # Zero-pad activations and weights (zeros contribute nothing to the dot products).
    x_p = jnp.zeros((s_pad, d_in_p), jnp.float32).at[:seq, :d_in].set(
        x.astype(jnp.float32))

    def _pad_w(w):
        return jnp.zeros((d_in_p, d_out_p), jnp.float32).at[:d_in, :d_out].set(
            w.astype(jnp.float32))

    w_qkv = jnp.concatenate([_pad_w(w_query), _pad_w(w_key), _pad_w(w_value)], axis=1)

    # ---- Pass 1: project Q/K/V once (Q carries the 1/sqrt(d_out) scale), output bf16. ----
    proj_kernel = functools.partial(_qkv_proj_kernel, scale=scale, d_out_pad=d_out_p)
    qkv_out = jax.ShapeDtypeStruct((s_pad, d_out_p), jnp.bfloat16)
    q, k, v = pl.pallas_call(
        proj_kernel,
        out_shape=(qkv_out, qkv_out, qkv_out),
        grid_spec=pltpu.PrefetchScalarGridSpec(
            num_scalar_prefetch=0,
            grid=(n_tiles,),
            in_specs=[
                pl.BlockSpec((t, d_in_p), lambda i: (i, 0)),             # x tile
                pl.BlockSpec((d_in_p, 3 * d_out_p), lambda i: (0, 0)),   # fused W_qkv
            ],
            out_specs=[
                pl.BlockSpec((t, d_out_p), lambda i: (i, 0)),
                pl.BlockSpec((t, d_out_p), lambda i: (i, 0)),
                pl.BlockSpec((t, d_out_p), lambda i: (i, 0)),
            ],
        ),
        compiler_params=pltpu.CompilerParams(
            dimension_semantics=("parallel",),
            vmem_limit_bytes=32 << 20),
    )(x_p, w_qkv)

    # ---- Pass 2: flash attention over (query tiles, key tiles). ----
    attn_kernel = functools.partial(_flash_attn_kernel, seq_len=seq, tk=t)
    out_padded = pl.pallas_call(
        attn_kernel,
        out_shape=jax.ShapeDtypeStruct((s_pad, d_out_p), jnp.float32),
        grid_spec=pltpu.PrefetchScalarGridSpec(
            num_scalar_prefetch=0,
            grid=(n_tiles, n_tiles),
            in_specs=[
                pl.BlockSpec((t, d_out_p), lambda qi, ki: (qi, 0)),      # Q tile
                pl.BlockSpec((t, d_out_p), lambda qi, ki: (ki, 0)),      # K tile
                pl.BlockSpec((t, d_out_p), lambda qi, ki: (ki, 0)),      # V tile
            ],
            out_specs=pl.BlockSpec((t, d_out_p), lambda qi, ki: (qi, 0)),
            scratch_shapes=[
                pltpu.VMEM((t, 1), jnp.float32),        # running max  m
                pltpu.VMEM((t, 1), jnp.float32),        # running sum  l
                pltpu.VMEM((t, d_out_p), jnp.float32),  # accumulator  acc
            ],
        ),
        compiler_params=pltpu.CompilerParams(
            dimension_semantics=("parallel", "arbitrary"),
            vmem_limit_bytes=32 << 20),
    )(q, k, v)

    return out_padded[:seq, :d_out]


def self_attention_v1_ref(x, w_query, w_key, w_value):
    """Pure-JAX reference mirroring the PyTorch module."""
    queries = x @ w_query
    keys = x @ w_key
    values = x @ w_value
    scores = queries @ keys.T
    weights = jax.nn.softmax(scores / (keys.shape[-1] ** 0.5), axis=-1)
    return weights @ values


if __name__ == "__main__":
    # Shapes implied by the module: inputs [6, 3], d_in=3, d_out=2.
    inputs = jnp.array([[0.43, 0.15, 0.89],
                        [0.55, 0.87, 0.66],
                        [0.57, 0.85, 0.64],
                        [0.22, 0.58, 0.33],
                        [0.77, 0.25, 0.10],
                        [0.05, 0.80, 0.55]], dtype=jnp.float32)
    d_in, d_out = inputs.shape[1], 2

    key = jax.random.PRNGKey(0)
    kq, kk, kv = jax.random.split(key, 3)
    # nn.Parameter(torch.rand(d_in, d_out)) -> uniform [0, 1) init, deterministic here.
    w_query = jax.random.uniform(kq, (d_in, d_out), dtype=jnp.float32)
    w_key = jax.random.uniform(kk, (d_in, d_out), dtype=jnp.float32)
    w_value = jax.random.uniform(kv, (d_in, d_out), dtype=jnp.float32)

    out = self_attention_v1(inputs, w_query, w_key, w_value)
    out = jax.block_until_ready(out)

    ref = self_attention_v1_ref(inputs, w_query, w_key, w_value)
    assert out.shape == (inputs.shape[0], d_out)
    # Tolerance reflects the intentional bf16 MXU path (Q/K/V and P cast to bf16,
    # fp32 accumulation); fp32 path would match to ~1e-6.
    assert jnp.allclose(out, ref, atol=3e-2, rtol=3e-2), "mismatch vs reference"

    print("KERNEL_OK")
</pallas_src>

<mosaic_0001>
module attributes {stable_mosaic.version = 11 : i64} {
  func.func @_qkv_proj_kernel(%arg0: i32, %arg1: memref<8x128xf32, #tpu.memory_space<vmem>>, %arg2: memref<128x384xf32, #tpu.memory_space<vmem>>, %arg3: memref<8x128xbf16, #tpu.memory_space<vmem>>, %arg4: memref<8x128xbf16, #tpu.memory_space<vmem>>, %arg5: memref<8x128xbf16, #tpu.memory_space<vmem>>) attributes {dimension_semantics = [#tpu.dimension_semantics<parallel>], iteration_bounds = array<i64: 1>, scalar_prefetch = 0 : i64, scratch_operands = 0 : i64, tpu.core_type = #tpu.core_type<tc>, window_params = [{transform_indices = @transform_0, window_bounds = array<i64: 8, 128>}, {pipeline_mode = #tpu.pipeline_mode<synchronous>, transform_indices = @transform_1, window_bounds = array<i64: 128, 384>}, {transform_indices = @transform_2, window_bounds = array<i64: 8, 128>}, {transform_indices = @transform_3, window_bounds = array<i64: 8, 128>}, {transform_indices = @transform_4, window_bounds = array<i64: 8, 128>}]} {
    %c0 = arith.constant 0 : index
    %c0_0 = arith.constant 0 : index
    %0 = vector.load %arg1[%c0, %c0_0] : memref<8x128xf32, #tpu.memory_space<vmem>>, vector<8x128xf32>
    %c0_1 = arith.constant 0 : index
    %c0_2 = arith.constant 0 : index
    %1 = vector.load %arg2[%c0_1, %c0_2] : memref<128x384xf32, #tpu.memory_space<vmem>>, vector<128x384xf32>
    %cst = arith.constant dense<0.000000e+00> : vector<8x384xf32>
    %2 = tpu.matmul %0, %1, %cst {dimension_numbers = #tpu.dot_dimension_numbers<[1], [0], [0], [1], [0, 0, 1, 1], [], []>} : vector<8x128xf32>, vector<128x384xf32>, vector<8x384xf32> -> vector<8x384xf32>
    %3 = vector.extract_strided_slice %2 {offsets = [0, 0], sizes = [8, 128], strides = [1, 1]} : vector<8x384xf32> to vector<8x128xf32>
    %cst_3 = arith.constant 0.707106769 : f32
    %4 = vector.broadcast %cst_3 : f32 to vector<8x128xf32>
    %5 = arith.mulf %3, %4 : vector<8x128xf32>
    %6 = arith.truncf %5 : vector<8x128xf32> to vector<8x128xbf16>
    %c0_4 = arith.constant 0 : index
    %c0_5 = arith.constant 0 : index
    %7 = vector.load %arg3[%c0_4, %c0_5] : memref<8x128xbf16, #tpu.memory_space<vmem>>, vector<8x128xbf16>
    tpu.vector_store %arg3[%c0_4, %c0_5], %6 {strides = array<i32>} : memref<8x128xbf16, #tpu.memory_space<vmem>>, vector<8x128xbf16>,
    %8 = vector.extract_strided_slice %2 {offsets = [0, 128], sizes = [8, 128], strides = [1, 1]} : vector<8x384xf32> to vector<8x128xf32>
    %9 = arith.truncf %8 : vector<8x128xf32> to vector<8x128xbf16>
    %c0_6 = arith.constant 0 : index
    %c0_7 = arith.constant 0 : index
    %10 = vector.load %arg4[%c0_6, %c0_7] : memref<8x128xbf16, #tpu.memory_space<vmem>>, vector<8x128xbf16>
    tpu.vector_store %arg4[%c0_6, %c0_7], %9 {strides = array<i32>} : memref<8x128xbf16, #tpu.memory_space<vmem>>, vector<8x128xbf16>,
    %11 = vector.extract_strided_slice %2 {offsets = [0, 256], sizes = [8, 128], strides = [1, 1]} : vector<8x384xf32> to vector<8x128xf32>
    %12 = arith.truncf %11 : vector<8x128xf32> to vector<8x128xbf16>
    %c0_8 = arith.constant 0 : index
    %c0_9 = arith.constant 0 : index
    %13 = vector.load %arg5[%c0_8, %c0_9] : memref<8x128xbf16, #tpu.memory_space<vmem>>, vector<8x128xbf16>
    tpu.vector_store %arg5[%c0_8, %c0_9], %12 {strides = array<i32>} : memref<8x128xbf16, #tpu.memory_space<vmem>>, vector<8x128xbf16>,
    return
  }
  func.func @transform_0(%arg0: i32) -> (i32, i32) {
    %c0_i32 = arith.constant 0 : i32
    %c0_i32_0 = arith.constant 0 : i32
    return %arg0, %c0_i32 : i32, i32
  }
  func.func @transform_1(%arg0: i32) -> (i32, i32) {
    %c0_i32 = arith.constant 0 : i32
    %c0_i32_0 = arith.constant 0 : i32
    %c0_i32_1 = arith.constant 0 : i32
    return %c0_i32, %c0_i32_0 : i32, i32
  }
  func.func @transform_2(%arg0: i32) -> (i32, i32) {
    %c0_i32 = arith.constant 0 : i32
    %c0_i32_0 = arith.constant 0 : i32
    return %arg0, %c0_i32 : i32, i32
  }
  func.func @transform_3(%arg0: i32) -> (i32, i32) {
    %c0_i32 = arith.constant 0 : i32
    %c0_i32_0 = arith.constant 0 : i32
    return %arg0, %c0_i32 : i32, i32
  }
  func.func @transform_4(%arg0: i32) -> (i32, i32) {
    %c0_i32 = arith.constant 0 : i32
    %c0_i32_0 = arith.constant 0 : i32
    return %arg0, %c0_i32 : i32, i32
  }
}

</mosaic_0001>

<bundles_post_ra>
// kernel: tpu_custom_call.1
= control target key start
LH: loop header
LB: loop body
LE: loop exit
PB: predicated region body
PF: predicated region fallthrough
CT: control target
= control target key end

     0   :  { %10 = vsyncpa [#allocation3], 0  ;;  %s642_s0 = inlined_call_operand.hbm [shape: f32[8,128], index: 0, kind: input, shape index: {}]   ;;  %s643_s1 = inlined_call_operand.hbm [shape: f32[128,384], index: 1, kind: input, shape index: {}]   ;;  %s644_s2 = inlined_call_operand.hbm [shape: bf16[8,128], index: 2, kind: output, shape index: {0}]   ;;  %s645_s3 = inlined_call_operand.hbm [shape: bf16[8,128], index: 3, kind: output, shape index: {1}]   ;;  %s646_s4 = inlined_call_operand.hbm [shape: bf16[8,128], index: 4, kind: output, shape index: {2}]  }
   0x1   :  { %11 = vsyncpa [#allocation6], 0 }
   0x2   :  { %12 = vsyncpa [#allocation4], 0 }
   0x3   :  { %13 = vsyncpa [#allocation9], 0  ;;  %s518_s15 = smov [#allocation2]   ;;  %s519_s17 = smov [#allocation5]  }
   0x4   :  { %s20_s16 = sshll.u32 %s518_s15, 4  ;;  %s29_s18 = sshll.u32 %s519_s17, 4  ;;  %s21_s16 = int_to_ptr.vmem [resolvable:$true] %s20_s16  ;;  %s553_s18 = int_to_ptr.vmem [resolvable:$true] %s29_s18 }
   0x5   :  { %s400_s21 = scalar_lea.hbm %s642_s0, 128 }
   0x6   :  { %p401_p0 = scmp.ne.s32.totalorder %s642_s0, %s400_s21  ;;  %p404_p1 = scmp.lt.u32.totalorder %s400_s21, %s642_s0 }
   0x8   :  { %p406_p2 = pnand %p404_p1, %p401_p0 }
   0xa   :  { %409 = shalt.err (!%p406_p2)
}
   0xb   :  { %s410_s26 = scalar_lea.vmem %s21_s16, 128  ;;  %p415_p4 = scmp.lt.s32.totalorder %s21_s16, %s21_s16 }
   0xc   :  { %p411_p3 = scmp.ne.s32.totalorder %s21_s16, %s410_s26  ;;  %p416_p5 = scmp.lt.s32.totalorder %s410_s26, %s410_s26 }
   0xe   :  { %p417_p6 = por %p416_p5, %p415_p4 }
  0x10   :  { %p418_p7 = pnand %p417_p6, %p411_p3 }
  0x12   :  { %421 = shalt.err (!%p418_p7)
}
  0x13   :  { %23 = dma.hbm_to_vmem [thread:$0]  %s642_s0, 128, %s21_s16, [#allocation3]  }
  0x14   :  { %s422_s5 = scalar_lea.hbm %s643_s1, 6144 }
  0x15   :  { %p423_p8 = scmp.ne.s32.totalorder %s643_s1, %s422_s5  ;;  %p426_p9 = scmp.lt.u32.totalorder %s422_s5, %s643_s1 }
  0x17   :  { %p428_p10 = pnand %p426_p9, %p423_p8 }
  0x19   :  { %431 = shalt.err (!%p428_p10)
}
  0x1a   :  { %s432_s10 = scalar_lea.vmem %s553_s18, 6144  ;;  %p437_p12 = scmp.lt.s32.totalorder %s553_s18, %s553_s18 }
  0x1b   :  { %p433_p11 = scmp.ne.s32.totalorder %s553_s18, %s432_s10  ;;  %p438_p13 = scmp.lt.s32.totalorder %s432_s10, %s432_s10 }
  0x1d   :  { %p439_p0 = por %p438_p13, %p437_p12 }
  0x1f   :  { %p440_p1 = pnand %p439_p0, %p433_p11 }
  0x21   :  { %443 = shalt.err (!%p440_p1)
}
  0x22   :  { %s520_s0 = smov 384   ;;  %s521_s11 = smov 24  }
  0x23   :  { %35 = dma.hbm_to_vmem [thread:$0]  %s643_s1, 6144, %s553_s18, [#allocation6], %s520_s0, %s520_s0, %s521_s11  }
  0x24   :  { %510 = dma.done.wait [#allocation3], 128  }
  0x25   :  { %511 = vsyncadd [#allocation3], 4294967168 }
  0x26   :  { %512 = dma.done.wait [#allocation6], 6144  }
  0x27   :  { %513 = vsyncadd [#allocation6], 4294961152  ;;  %v522_v0 = vmov 0.0|0.0   ;;  %v523_v1 = vmov 0.0   ;;  %vm524_vm0 = vmmov 0   ;;  %v44_v2 = vld [vmem:[#allocation5 + $0x8] sm:$0xff] }
  0x28   :  { %366 = vmatprep.subr.bf16.mxu1 %v522_v0  ;;  %155 = vmatprep.mubr.f32.mxu0 %v523_v1  ;;  %v47_v3 = vld [vmem:[#allocation5 + $0x20] sm:$0xff]  ;;  %v46_v6 = vld [vmem:[#allocation5 + $0x18] sm:$0xff]  ;;  %v45_v7 = vld [vmem:[#allocation5 + $0x10] sm:$0xff]  ;;  %s525_s1 = smov [#allocation8]   ;;  %s526_s15 = smov [#allocation7]  }
  0x29   :  { %331 = vmatprep.mubr.msk.f32.mxu1 %vm524_vm0, %v523_v1  ;;  %v43_v4 = vld [vmem:[#allocation5] sm:$0xff]  ;;  %v334_v5 = vpack.c.bf16 %v47_v3, %v44_v2  ;;  %v48_v8 = vld [vmem:[#allocation5 + $0x28] sm:$0xff]  ;;  %v50_v11 = vld [vmem:[#allocation5 + $0x38] sm:$0xff]  ;;  %s255_s14 = sshll.u32 %s525_s1, 4  ;;  %s245_s16 = sshll.u32 %s526_s15, 4  ;;  %s256_s14 = int_to_ptr.vmem [resolvable:$true] %s255_s14  ;;  %s592_s16 = int_to_ptr.vmem [resolvable:$true] %s245_s16 }
  0x2a   :  { %v336_v9 = vpack.c.bf16 %v46_v6, %v43_v4  ;;  %v367_v10 = vpack.c.bf16 %v48_v8, %v45_v7  ;;  %v53_v12 = vld [vmem:[#allocation5 + $0x50] sm:$0xff]  ;;  %v52_v15 = vld [vmem:[#allocation5 + $0x48] sm:$0xff]  ;;  %v51_v16 = vld [vmem:[#allocation5 + $0x40] sm:$0xff]  ;;  %s527_s17 = smov [#allocation10]   ;;  %s444_s19 = scalar_lea.vmem %s256_s14, 64 }
  0x2b   :  { %v49_v13 = vld [vmem:[#allocation5 + $0x30] sm:$0xff]  ;;  %335 = vmatprep.subr.bf16.mxu0 %v334_v5  ;;  %v338_v14 = vpack.c.bf16 %v53_v12, %v50_v11  ;;  %v54_v17 = vld [vmem:[#allocation5 + $0x58] sm:$0xff]  ;;  %v56_v20 = vld [vmem:[#allocation5 + $0x68] sm:$0xff]  ;;  %s265_s18 = sshll.u32 %s527_s17, 4  ;;  %p445_p2 = scmp.ne.s32.totalorder %s256_s14, %s444_s19  ;;  %s594_s18 = int_to_ptr.vmem [resolvable:$true] %s265_s18 }
  0x2c   :  { %337 = vmatpush1.bf16.msra.mxu0 %v336_v9  ;;  %368 = vmatpush3.bf16.msra.mxu1 %v367_v10  ;;  %v340_v18 = vpack.c.bf16 %v52_v15, %v49_v13  ;;  %v370_v19 = vpack.c.bf16 %v54_v17, %v51_v16  ;;  %v59_v21 = vld [vmem:[#allocation5 + $0x80] sm:$0xff]  ;;  %v58_v24 = vld [vmem:[#allocation5 + $0x78] sm:$0xff]  ;;  %v57_v25 = vld [vmem:[#allocation5 + $0x70] sm:$0xff]  ;;  %p449_p3 = scmp.lt.s32.totalorder %s256_s14, %s256_s14  ;;  %p450_p4 = scmp.lt.s32.totalorder %s444_s19, %s444_s19 }
  0x2d   :  { %v55_v22 = vld [vmem:[#allocation5 + $0x60] sm:$0xff]  ;;  %339 = vmatprep.subr.bf16.mxu0 %v338_v14  ;;  %369 = vmatprep.subr.bf16.mxu1 %v522_v0  ;;  %v342_v23 = vpack.c.bf16 %v59_v21, %v56_v20  ;;  %v60_v26 = vld [vmem:[#allocation5 + $0x88] sm:$0xff]  ;;  %v62_v27 = vld [vmem:[#allocation5 + $0x98] sm:$0xff] }
  0x2e   :  { %v65_v28 = vld [vmem:[#allocation5 + $0xb0] sm:$0xff]  ;;  %v344_v29 = vpack.c.bf16 %v58_v24, %v55_v22  ;;  %v373_v30 = vpack.c.bf16 %v60_v26, %v57_v25  ;;  %v64_v33 = vld [vmem:[#allocation5 + $0xa8] sm:$0xff]  ;;  %v63_v34 = vld [vmem:[#allocation5 + $0xa0] sm:$0xff]  ;;  %p451_p5 = por %p450_p4, %p449_p3 }
  0x2f   :  { %v61_v31 = vld [vmem:[#allocation5 + $0x90] sm:$0xff]  ;;  %v346_v32 = vpack.c.bf16 %v65_v28, %v62_v27  ;;  %v66_v35 = vld [vmem:[#allocation5 + $0xb8] sm:$0xff]  ;;  %v68_v36 = vld [vmem:[#allocation5 + $0xc8] sm:$0xff] }
  0x30   :  { %341 = vmatpush1.bf16.msra.mxu0 %v340_v18  ;;  %371 = vmatpush3.bf16.msra.mxu1 %v370_v19  ;;  %v71_v37 = vld [vmem:[#allocation5 + $0xe0] sm:$0xff]  ;;  %v348_v38 = vpack.c.bf16 %v64_v33, %v61_v31  ;;  %v376_v39 = vpack.c.bf16 %v66_v35, %v63_v34  ;;  %v70_v42 = vld [vmem:[#allocation5 + $0xd8] sm:$0xff]  ;;  %v69_v43 = vld [vmem:[#allocation5 + $0xd0] sm:$0xff]  ;;  %p452_p6 = pnand %p451_p5, %p445_p2 }
  0x31   :  { %343 = vmatprep.subr.bf16.mxu0 %v342_v23  ;;  %372 = vmatprep.subr.bf16.mxu1 %v522_v0  ;;  %v67_v40 = vld [vmem:[#allocation5 + $0xc0] sm:$0xff]  ;;  %v350_v41 = vpack.c.bf16 %v71_v37, %v68_v36  ;;  %v72_v44 = vld [vmem:[#allocation5 + $0xe8] sm:$0xff]  ;;  %v74_v45 = vld [vmem:[#allocation5 + $0xf8] sm:$0xff] }
  0x32   :  { %v77_v46 = vld [vmem:[#allocation5 + $0x110] sm:$0xff]  ;;  %v352_v47 = vpack.c.bf16 %v70_v42, %v67_v40  ;;  %v379_v48 = vpack.c.bf16 %v72_v44, %v69_v43  ;;  %v76_v51 = vld [vmem:[#allocation5 + $0x108] sm:$0xff]  ;;  %v75_v52 = vld [vmem:[#allocation5 + $0x100] sm:$0xff] }
  0x33   :  { %v73_v49 = vld [vmem:[#allocation5 + $0xf0] sm:$0xff]  ;;  %v354_v50 = vpack.c.bf16 %v77_v46, %v74_v45  ;;  %v78_v53 = vld [vmem:[#allocation5 + $0x118] sm:$0xff]  ;;  %v80_v54 = vld [vmem:[#allocation5 + $0x128] sm:$0xff] }
  0x34   :  { %345 = vmatpush1.bf16.msra.mxu0 %v344_v29  ;;  %374 = vmatpush3.bf16.msra.mxu1 %v373_v30  ;;  %v83_v55 = vld [vmem:[#allocation5 + $0x140] sm:$0xff]  ;;  %v356_v56 = vpack.c.bf16 %v76_v51, %v73_v49  ;;  %v382_v57 = vpack.c.bf16 %v78_v53, %v75_v52  ;;  %v82_v60 = vld [vmem:[#allocation5 + $0x138] sm:$0xff]  ;;  %v81_v61 = vld [vmem:[#allocation5 + $0x130] sm:$0xff] }
  0x35   :  { %347 = vmatprep.subr.bf16.mxu0 %v346_v32  ;;  %375 = vmatprep.subr.bf16.mxu1 %v522_v0  ;;  %v79_v58 = vld [vmem:[#allocation5 + $0x120] sm:$0xff]  ;;  %v358_v59 = vpack.c.bf16 %v83_v55, %v80_v54  ;;  %v84_v62 = vld [vmem:[#allocation5 + $0x148] sm:$0xff]  ;;  %v86_v63 = vld [vmem:[#allocation5 + $0x158] sm:$0xff] }
  0x36   :  { %v89_v1 = vld [vmem:[#allocation5 + $0x170] sm:$0xff]  ;;  %v360_v2 = vpack.c.bf16 %v82_v60, %v79_v58  ;;  %v385_v3 = vpack.c.bf16 %v84_v62, %v81_v61  ;;  %v88_v6 = vld [vmem:[#allocation5 + $0x168] sm:$0xff]  ;;  %v87_v7 = vld [vmem:[#allocation5 + $0x160] sm:$0xff] }
  0x37   :  { %v85_v4 = vld [vmem:[#allocation5 + $0x150] sm:$0xff]  ;;  %v362_v5 = vpack.c.bf16 %v89_v1, %v86_v63  ;;  %v90_v8 = vld [vmem:[#allocation5 + $0x178] sm:$0xff] }
  0x38   :  { %349 = vmatpush1.bf16.msra.mxu0 %v348_v38  ;;  %377 = vmatpush3.bf16.msra.mxu1 %v376_v39  ;;  %v364_v9 = vpack.c.bf16 %v88_v6, %v85_v4  ;;  %v388_v10 = vpack.c.bf16 %v90_v8, %v87_v7  ;;  %v42_v11 = vld [vmem:[#allocation2] sm:$0xff] }
  0x39   :  { %351 = vmatprep.subr.bf16.mxu0 %v350_v41  ;;  %378 = vmatprep.subr.bf16.mxu1 %v522_v0 }
  0x3c   :  { %353 = vmatpush1.bf16.msra.mxu0 %v352_v47  ;;  %380 = vmatpush3.bf16.msra.mxu1 %v379_v48 }
  0x3d   :  { %355 = vmatprep.subr.bf16.mxu0 %v354_v50  ;;  %381 = vmatprep.subr.bf16.mxu1 %v522_v0 }
  0x40   :  { %357 = vmatpush1.bf16.msra.mxu0 %v356_v56  ;;  %383 = vmatpush3.bf16.msra.mxu1 %v382_v57 }
  0x41   :  { %359 = vmatprep.subr.bf16.mxu0 %v358_v59  ;;  %384 = vmatprep.subr.bf16.mxu1 %v522_v0 }
  0x44   :  { %361 = vmatpush1.bf16.msra.mxu0 %v360_v2  ;;  %386 = vmatpush3.bf16.msra.mxu1 %v385_v3 }
  0x45   :  { %363 = vmatprep.subr.bf16.mxu0 %v362_v5  ;;  %387 = vmatprep.subr.bf16.mxu1 %v522_v0 }
  0x48   :  { %365 = vmatpush1.bf16.msra.mxu0 %v364_v9  ;;  %389 = vmatpush3.bf16.msra.mxu1 %v388_v10 }
  0x4b   :  { %156 = vmatmul.mubr.f32.vlgmr.msra.gmra.mrb[0].mxu0 %v42_v11  ;;  %332 = vmatmul.mubr.f32.vlgmr.msra.gmra.mrb[0].mxu1 %v42_v11 }
 0x11e   :  { %v157_v12 = vpop.f32.mrb[0].mxu0  ;;  %v228_v13 = vpop.f32.mrb[0].mxu1 }
 0x11f   :  { %v232_v14 = vmul.f32 0.70710677, %v157_v12  ;;  %v159_v15 = vpop.f32.mrb[1].mxu0  ;;  %v237_v16 = vpack.c.bf16 %v228_v13, %v228_v13  ;;  %v333_v17 = vpop.f32.mrb[1].mxu1 }
 0x120   :  { %v235_v18 = vpack.c.bf16 %v159_v15, %v159_v15 }
 0x121   :  { %v233_v0 = vpack.c.bf16 %v232_v14, %v232_v14  ;;  %238 = vst [vmem:[#allocation10] sm:$0xf] %v237_v16 }
 0x122   :  { %236 = vst [vmem:[#allocation8] sm:$0xf] %v235_v18 }
 0x123   :  { %234 = vst [vmem:[#allocation7] sm:$0xf] %v233_v0 }
 0x124   :  { %455 = shalt.err (!%p452_p6)
}
 0x125   :  { %s456_s22 = scalar_lea.hbm %s645_s3, 64 }
 0x126   :  { %p457_p7 = scmp.ne.s32.totalorder %s645_s3, %s456_s22  ;;  %p460_p8 = scmp.lt.u32.totalorder %s456_s22, %s645_s3 }
 0x128   :  { %p462_p9 = pnand %p460_p8, %p457_p7 }
 0x12a   :  { %465 = shalt.err (!%p462_p9)
}
 0x12b   :  { %258 = dma.vmem_to_hbm [thread:$0]  %s256_s14, 64, %s645_s3, [#allocation9]  }
 0x12c   :  { %s466_s29 = scalar_lea.vmem %s592_s16, 64  ;;  %p471_p11 = scmp.lt.s32.totalorder %s592_s16, %s592_s16 }
 0x12d   :  { %p467_p10 = scmp.ne.s32.totalorder %s592_s16, %s466_s29  ;;  %p472_p12 = scmp.lt.s32.totalorder %s466_s29, %s466_s29 }
 0x12f   :  { %p473_p13 = por %p472_p12, %p471_p11 }
 0x131   :  { %p474_p0 = pnand %p473_p13, %p467_p10 }
 0x133   :  { %477 = shalt.err (!%p474_p0)
}
 0x134   :  { %s478_s6 = scalar_lea.hbm %s644_s2, 64 }
 0x135   :  { %p479_p1 = scmp.ne.s32.totalorder %s644_s2, %s478_s6  ;;  %p482_p2 = scmp.lt.u32.totalorder %s478_s6, %s644_s2 }
 0x137   :  { %p484_p3 = pnand %p482_p2, %p479_p1 }
 0x139   :  { %487 = shalt.err (!%p484_p3)
}
 0x13a   :  { %248 = dma.vmem_to_hbm [thread:$0]  %s592_s16, 64, %s644_s2, [#allocation4]  }
 0x13b   :  { %s488_s11 = scalar_lea.vmem %s594_s18, 64  ;;  %p493_p5 = scmp.lt.s32.totalorder %s594_s18, %s594_s18 }
 0x13c   :  { %p489_p4 = scmp.ne.s32.totalorder %s594_s18, %s488_s11  ;;  %p494_p6 = scmp.lt.s32.totalorder %s488_s11, %s488_s11 }
 0x13e   :  { %p495_p7 = por %p494_p6, %p493_p5 }
 0x140   :  { %p496_p8 = pnand %p495_p7, %p489_p4 }
 0x142   :  { %499 = shalt.err (!%p496_p8)
}
 0x143   :  { %s500_s1 = scalar_lea.hbm %s646_s4, 64 }
 0x144   :  { %p501_p9 = scmp.ne.s32.totalorder %s646_s4, %s500_s1  ;;  %p504_p10 = scmp.lt.u32.totalorder %s500_s1, %s646_s4 }
 0x146   :  { %p506_p11 = pnand %p504_p10, %p501_p9 }
 0x148   :  { %509 = shalt.err (!%p506_p11)
}
 0x149   :  { %268 = dma.vmem_to_hbm [thread:$0]  %s594_s18, 64, %s646_s4, [#allocation9]  }
 0x14a   :  { %514 = dma.done.wait [#allocation4], 64  }
 0x14b   :  { %515 = vsyncadd [#allocation4], 4294967232 }
 0x14c   :  { %516 = dma.done.wait [#allocation9], 128  }
 0x14d   :  { %517 = vsyncadd [#allocation9], 4294967168 }
 0x14e   :  { %278 = vsyncpa [#allocation3], 1 }
 0x14f   :  { %279 = vsyncpa [#allocation6], 1 }
 0x150   :  { %280 = vsyncpa [#allocation4], 1 }
 0x151   :  { %281 = vsyncpa [#allocation9], 1 }

</bundles_post_ra>
